<compile_context>
chip_gen: v5e
topology: v5e:2x2
jax: 0.10.0
libtpu: 0.0.40
codegen_flags: <defaults>
</compile_context>

<pallas_src>
import functools
import numpy as np
import jax
import jax.numpy as jnp
from jax.experimental import pallas as pl
from jax.experimental.pallas import tpu as pltpu


# --------------------------------- the kernel --------------------------------

def sln_kernel(hl_ref, w_ref, modw_ref, modb_ref, out_ref, *, eps):
    f32 = jnp.float32
    hl = hl_ref[...].astype(f32)           # (tT, D)
    wv = w_ref[...].astype(f32)            # (1, D)
    D = hl.shape[-1]

    # fused [gamma | beta] modulation: one (1, D) @ (D, 2D) MXU matmul
    mod = jnp.dot(wv, modw_ref[...], preferred_element_type=f32) + modb_ref[...]
    gamma = mod[:, :D]                     # (1, D) — broadcasts over tokens
    beta = mod[:, D:]

    # nn.LayerNorm(eps=1e-3, elementwise_affine=False): biased var, last dim
    mu = jnp.mean(hl, axis=-1, keepdims=True)
    var = jnp.mean(jnp.square(hl - mu), axis=-1, keepdims=True)
    ln = (hl - mu) * jax.lax.rsqrt(var + eps)

    out_ref[...] = (ln * (1.0 + gamma) + beta).astype(out_ref.dtype)


# ------------------------------- pallas wrapper -------------------------------

def _token_tile(T, max_tile=512):
    """Largest divisor of T that keeps the tile <= max_tile (multiple of 8 when
    tiling; full T when it already fits)."""
    if T <= max_tile:
        return T
    best = 0
    for t in range(8, max_tile + 1, 8):
        if T % t == 0:
            best = t
    return best if best > 0 else T


def sln_pallas(hl, w, modw, modb, *, eps=1e-3):
    B, T, D = hl.shape
    assert w.shape == (B, 1, D)
    assert modw.shape == (D, 2 * D) and modb.shape == (1, 2 * D)
    tT = _token_tile(T)
    nT = T // tT

    kernel = functools.partial(sln_kernel, eps=eps)

    # explicit VMEM budget: fused weights + double-buffered activation tiles
    weight_bytes = (int(np.prod(modw.shape)) + int(np.prod(modb.shape))) * 4
    act_bytes = 6 * tT * D * 4
    vmem_limit = int(min(max(2 * (weight_bytes + act_bytes), 8 * 2 ** 20),
                         64 * 2 ** 20))

    def build(weight_mode):
        def wspec(a):
            idx = lambda b, t, n=a.ndim: (0,) * n
            if weight_mode is None:
                return pl.BlockSpec(a.shape, idx)
            return pl.BlockSpec(a.shape, idx, pipeline_mode=weight_mode)

        return pl.pallas_call(
            kernel,
            out_shape=jax.ShapeDtypeStruct((B, T, D), hl.dtype),
            grid_spec=pltpu.PrefetchScalarGridSpec(
                num_scalar_prefetch=0,
                grid=(B, nT),
                in_specs=[pl.BlockSpec((None, tT, D), lambda b, t: (b, t, 0)),  # hl tile
                          pl.BlockSpec((None, 1, D), lambda b, t: (b, 0, 0)),   # latent w
                          wspec(modw), wspec(modb)],
                out_specs=pl.BlockSpec((None, tT, D), lambda b, t: (b, t, 0)),
            ),
            compiler_params=pltpu.CompilerParams(
                dimension_semantics=("parallel", "parallel"),
                vmem_limit_bytes=vmem_limit),
        )

    try:
        # weight block indices are constant across the grid -> single-buffer
        return build(pl.Buffered(1))(hl, w, modw, modb)
    except Exception:
        # TODO(synk): fallback if this JAX build rejects pipeline_mode=pl.Buffered(1).
        return build(None)(hl, w, modw, modb)


# ----------------------- parameter init & host-side prep ----------------------

def init_sln_params(key, dim):
    """EqualLinear(dim, dim, lr_mul=1): weight ~ N(0,1); bias here is a small
    random vector (PyTorch init is zeros) so the bias path is exercised."""
    kg, kb, kgb, kbb = jax.random.split(key, 4)
    return dict(
        gamma_w=jax.random.normal(kg, (dim, dim), jnp.float32),
        gamma_b=0.1 * jax.random.normal(kgb, (dim,), jnp.float32),
        beta_w=jax.random.normal(kb, (dim, dim), jnp.float32),
        beta_b=0.1 * jax.random.normal(kbb, (dim,), jnp.float32),
    )


def prep_sln_params(p, dim):
    """Host-side: fold the EqualLinear scale (1/sqrt(D)), transpose to x@W
    layout, and fuse gamma & beta into one (D, 2D) matrix + one (1, 2D) bias."""
    eq_scale = 1.0 / np.sqrt(dim)
    modw = jnp.concatenate([(p['gamma_w'] * eq_scale).T,
                            (p['beta_w'] * eq_scale).T], axis=1)
    modb = jnp.concatenate([p['gamma_b'], p['beta_b']])[None, :]
    return modw.astype(jnp.float32), modb.astype(jnp.float32)


# ------------------------------ pure-JAX reference ----------------------------

def ref_sln(hl, w, p, eps=1e-3):
    D = hl.shape[-1]
    eq_scale = 1.0 / np.sqrt(D)
    gamma = w @ (p['gamma_w'] * eq_scale).T + p['gamma_b']   # (B, 1, D)
    beta = w @ (p['beta_w'] * eq_scale).T + p['beta_b']      # (B, 1, D)
    mu = jnp.mean(hl, axis=-1, keepdims=True)
    var = jnp.mean((hl - mu) ** 2, axis=-1, keepdims=True)
    ln = (hl - mu) / jnp.sqrt(var + eps)
    return ln * (1.0 + gamma) + beta


# ------------------------------------ main ------------------------------------

if __name__ == "__main__":
    B, T, D = 2, 8, 32

    key = jax.random.PRNGKey(0)
    k_hl, k_w, k_p = jax.random.split(key, 3)
    hl = jax.random.normal(k_hl, (B, T, D), jnp.float32)
    w = jax.random.normal(k_w, (B, 1, D), jnp.float32)

    params = init_sln_params(k_p, D)
    modw, modb = prep_sln_params(params, D)

    out = sln_pallas(hl, w, modw, modb)
    out = jax.block_until_ready(out)

    ref = jax.block_until_ready(ref_sln(hl, w, params))
    err = float(jnp.max(jnp.abs(out - ref)))
    # all math is f32; small slack for MXU pass precision on the tiny matmul
    assert err < 1e-2, f"mismatch vs reference: {err}"
    print("KERNEL_OK")
</pallas_src>

<mosaic_0001>
module attributes {stable_mosaic.version = 11 : i64} {
  func.func @sln_kernel(%arg0: i32, %arg1: i32, %arg2: memref<1x8x32xf32, #tpu.memory_space<vmem>>, %arg3: memref<1x1x32xf32, #tpu.memory_space<vmem>>, %arg4: memref<32x64xf32, #tpu.memory_space<vmem>>, %arg5: memref<1x64xf32, #tpu.memory_space<vmem>>, %arg6: memref<1x8x32xf32, #tpu.memory_space<vmem>>) attributes {dimension_semantics = [#tpu.dimension_semantics<parallel>, #tpu.dimension_semantics<parallel>], iteration_bounds = array<i64: 2, 1>, scalar_prefetch = 0 : i64, scratch_operands = 0 : i64, tpu.core_type = #tpu.core_type<tc>, window_params = [{transform_indices = @transform_0, window_bounds = array<i64: 1, 8, 32>}, {transform_indices = @transform_1, window_bounds = array<i64: 1, 1, 32>}, {pipeline_mode = #tpu.pipeline_mode<synchronous>, transform_indices = @transform_2, window_bounds = array<i64: 32, 64>}, {pipeline_mode = #tpu.pipeline_mode<synchronous>, transform_indices = @transform_3, window_bounds = array<i64: 1, 64>}, {transform_indices = @transform_4, window_bounds = array<i64: 1, 8, 32>}]} {
    %c0 = arith.constant 0 : index
    %c0_0 = arith.constant 0 : index
    %c0_1 = arith.constant 0 : index
    %0 = vector.load %arg2[%c0, %c0_0, %c0_1] : memref<1x8x32xf32, #tpu.memory_space<vmem>>, vector<1x8x32xf32>
    %1 = vector.shape_cast %0 : vector<1x8x32xf32> to vector<8x32xf32>
    %c0_2 = arith.constant 0 : index
    %c0_3 = arith.constant 0 : index
    %c0_4 = arith.constant 0 : index
    %2 = vector.load %arg3[%c0_2, %c0_3, %c0_4] : memref<1x1x32xf32, #tpu.memory_space<vmem>>, vector<1x1x32xf32>
    %3 = vector.shape_cast %2 : vector<1x1x32xf32> to vector<1x32xf32>
    %c0_5 = arith.constant 0 : index
    %c0_6 = arith.constant 0 : index
    %4 = vector.load %arg4[%c0_5, %c0_6] : memref<32x64xf32, #tpu.memory_space<vmem>>, vector<32x64xf32>
    %cst = arith.constant dense<0.000000e+00> : vector<1x64xf32>
    %5 = tpu.matmul %3, %4, %cst {dimension_numbers = #tpu.dot_dimension_numbers<[1], [0], [0], [1], [0, 0, 1, 1], [], []>} : vector<1x32xf32>, vector<32x64xf32>, vector<1x64xf32> -> vector<1x64xf32>
    %c0_7 = arith.constant 0 : index
    %c0_8 = arith.constant 0 : index
    %6 = vector.load %arg5[%c0_7, %c0_8] : memref<1x64xf32, #tpu.memory_space<vmem>>, vector<1x64xf32>
    %7 = arith.addf %5, %6 : vector<1x64xf32>
    %8 = vector.extract_strided_slice %7 {offsets = [0, 0], sizes = [1, 32], strides = [1, 1]} : vector<1x64xf32> to vector<1x32xf32>
    %9 = vector.extract_strided_slice %7 {offsets = [0, 32], sizes = [1, 32], strides = [1, 1]} : vector<1x64xf32> to vector<1x32xf32>
    %cst_9 = arith.constant dense<0.000000e+00> : vector<8xf32>
    %10 = vector.multi_reduction <add>, %1, %cst_9 [1] : vector<8x32xf32> to vector<8xf32>
    %11 = vector.shape_cast %10 : vector<8xf32> to vector<8x1xf32>
    %cst_10 = arith.constant 3.200000e+01 : f32
    %12 = vector.broadcast %cst_10 : f32 to vector<8x1xf32>
    %13 = arith.divf %11, %12 : vector<8x1xf32>
    %14 = vector.broadcast %13 : vector<8x1xf32> to vector<8x32xf32>
    %15 = arith.subf %1, %14 : vector<8x32xf32>
    %16 = arith.mulf %15, %15 : vector<8x32xf32>
    %cst_11 = arith.constant dense<0.000000e+00> : vector<8xf32>
    %17 = vector.multi_reduction <add>, %16, %cst_11 [1] : vector<8x32xf32> to vector<8xf32>
    %18 = vector.shape_cast %17 : vector<8xf32> to vector<8x1xf32>
    %cst_12 = arith.constant 3.200000e+01 : f32
    %19 = vector.broadcast %cst_12 : f32 to vector<8x1xf32>
    %20 = arith.divf %18, %19 : vector<8x1xf32>
    %21 = vector.broadcast %13 : vector<8x1xf32> to vector<8x32xf32>
    %22 = arith.subf %1, %21 : vector<8x32xf32>
    %cst_13 = arith.constant 1.000000e-03 : f32
    %23 = vector.broadcast %cst_13 : f32 to vector<8x1xf32>
    %24 = arith.addf %20, %23 : vector<8x1xf32>
    %25 = math.rsqrt %24 : vector<8x1xf32>
    %26 = vector.broadcast %25 : vector<8x1xf32> to vector<8x32xf32>
    %27 = arith.mulf %22, %26 : vector<8x32xf32>
    %cst_14 = arith.constant 1.000000e+00 : f32
    %28 = vector.broadcast %cst_14 : f32 to vector<1x32xf32>
    %29 = arith.addf %28, %8 : vector<1x32xf32>
    %30 = vector.broadcast %29 : vector<1x32xf32> to vector<8x32xf32>
    %31 = arith.mulf %27, %30 : vector<8x32xf32>
    %32 = vector.broadcast %9 : vector<1x32xf32> to vector<8x32xf32>
    %33 = arith.addf %31, %32 : vector<8x32xf32>
    %c0_15 = arith.constant 0 : index
    %c0_16 = arith.constant 0 : index
    %c0_17 = arith.constant 0 : index
    %34 = vector.load %arg6[%c0_15, %c0_16, %c0_17] : memref<1x8x32xf32, #tpu.memory_space<vmem>>, vector<1x8x32xf32>
    %35 = vector.shape_cast %34 : vector<1x8x32xf32> to vector<8x32xf32>
    %36 = vector.shape_cast %33 : vector<8x32xf32> to vector<1x8x32xf32>
    tpu.vector_store %arg6[%c0_15, %c0_16, %c0_17], %36 {strides = array<i32>} : memref<1x8x32xf32, #tpu.memory_space<vmem>>, vector<1x8x32xf32>,
    return
  }
  func.func @transform_0(%arg0: i32, %arg1: i32) -> (i32, i32, i32) {
    %c0_i32 = arith.constant 0 : i32
    %c0_i32_0 = arith.constant 0 : i32
    return %arg0, %arg1, %c0_i32 : i32, i32, i32
  }
  func.func @transform_1(%arg0: i32, %arg1: i32) -> (i32, i32, i32) {
    %c0_i32 = arith.constant 0 : i32
    %c0_i32_0 = arith.constant 0 : i32
    %c0_i32_1 = arith.constant 0 : i32
    return %arg0, %c0_i32, %c0_i32_0 : i32, i32, i32
  }
  func.func @transform_2(%arg0: i32, %arg1: i32) -> (i32, i32) {
    %c0_i32 = arith.constant 0 : i32
    %c0_i32_0 = arith.constant 0 : i32
    %c0_i32_1 = arith.constant 0 : i32
    return %c0_i32, %c0_i32_0 : i32, i32
  }
  func.func @transform_3(%arg0: i32, %arg1: i32) -> (i32, i32) {
    %c0_i32 = arith.constant 0 : i32
    %c0_i32_0 = arith.constant 0 : i32
    %c0_i32_1 = arith.constant 0 : i32
    return %c0_i32, %c0_i32_0 : i32, i32
  }
  func.func @transform_4(%arg0: i32, %arg1: i32) -> (i32, i32, i32) {
    %c0_i32 = arith.constant 0 : i32
    %c0_i32_0 = arith.constant 0 : i32
    return %arg0, %arg1, %c0_i32 : i32, i32, i32
  }
}

module attributes {stable_mosaic.version = 11 : i64} {
  func.func @sln_kernel(%arg0: i32, %arg1: i32, %arg2: memref<1x8x32xf32, #tpu.memory_space<vmem>>, %arg3: memref<1x1x32xf32, #tpu.memory_space<vmem>>, %arg4: memref<32x64xf32, #tpu.memory_space<vmem>>, %arg5: memref<1x64xf32, #tpu.memory_space<vmem>>, %arg6: memref<1x8x32xf32, #tpu.memory_space<vmem>>) attributes {dimension_semantics = [#tpu.dimension_semantics<parallel>, #tpu.dimension_semantics<parallel>], iteration_bounds = array<i64: 2, 1>, scalar_prefetch = 0 : i64, scratch_operands = 0 : i64, tpu.core_type = #tpu.core_type<tc>, window_params = [{transform_indices = @transform_0, window_bounds = array<i64: 1, 8, 32>}, {transform_indices = @transform_1, window_bounds = array<i64: 1, 1, 32>}, {pipeline_mode = #tpu.pipeline_mode<synchronous>, transform_indices = @transform_2, window_bounds = array<i64: 32, 64>}, {pipeline_mode = #tpu.pipeline_mode<synchronous>, transform_indices = @transform_3, window_bounds = array<i64: 1, 64>}, {transform_indices = @transform_4, window_bounds = array<i64: 1, 8, 32>}]} {
    %c0 = arith.constant 0 : index
    %c0_0 = arith.constant 0 : index
    %c0_1 = arith.constant 0 : index
    %0 = vector.load %arg2[%c0, %c0_0, %c0_1] : memref<1x8x32xf32, #tpu.memory_space<vmem>>, vector<1x8x32xf32>
    %1 = vector.shape_cast %0 : vector<1x8x32xf32> to vector<8x32xf32>
    %c0_2 = arith.constant 0 : index
    %c0_3 = arith.constant 0 : index
    %c0_4 = arith.constant 0 : index
    %2 = vector.load %arg3[%c0_2, %c0_3, %c0_4] : memref<1x1x32xf32, #tpu.memory_space<vmem>>, vector<1x1x32xf32>
    %3 = vector.shape_cast %2 : vector<1x1x32xf32> to vector<1x32xf32>
    %c0_5 = arith.constant 0 : index
    %c0_6 = arith.constant 0 : index
    %4 = vector.load %arg4[%c0_5, %c0_6] : memref<32x64xf32, #tpu.memory_space<vmem>>, vector<32x64xf32>
    %cst = arith.constant dense<0.000000e+00> : vector<1x64xf32>
    %5 = tpu.matmul %3, %4, %cst {dimension_numbers = #tpu.dot_dimension_numbers<[1], [0], [0], [1], [0, 0, 1, 1], [], []>} : vector<1x32xf32>, vector<32x64xf32>, vector<1x64xf32> -> vector<1x64xf32>
    %c0_7 = arith.constant 0 : index
    %c0_8 = arith.constant 0 : index
    %6 = vector.load %arg5[%c0_7, %c0_8] : memref<1x64xf32, #tpu.memory_space<vmem>>, vector<1x64xf32>
    %7 = arith.addf %5, %6 : vector<1x64xf32>
    %8 = vector.extract_strided_slice %7 {offsets = [0, 0], sizes = [1, 32], strides = [1, 1]} : vector<1x64xf32> to vector<1x32xf32>
    %9 = vector.extract_strided_slice %7 {offsets = [0, 32], sizes = [1, 32], strides = [1, 1]} : vector<1x64xf32> to vector<1x32xf32>
    %cst_9 = arith.constant dense<0.000000e+00> : vector<8xf32>
    %10 = vector.multi_reduction <add>, %1, %cst_9 [1] : vector<8x32xf32> to vector<8xf32>
    %11 = vector.shape_cast %10 : vector<8xf32> to vector<8x1xf32>
    %cst_10 = arith.constant 3.200000e+01 : f32
    %12 = vector.broadcast %cst_10 : f32 to vector<8x1xf32>
    %13 = arith.divf %11, %12 : vector<8x1xf32>
    %14 = vector.broadcast %13 : vector<8x1xf32> to vector<8x32xf32>
    %15 = arith.subf %1, %14 : vector<8x32xf32>
    %16 = arith.mulf %15, %15 : vector<8x32xf32>
    %cst_11 = arith.constant dense<0.000000e+00> : vector<8xf32>
    %17 = vector.multi_reduction <add>, %16, %cst_11 [1] : vector<8x32xf32> to vector<8xf32>
    %18 = vector.shape_cast %17 : vector<8xf32> to vector<8x1xf32>
    %cst_12 = arith.constant 3.200000e+01 : f32
    %19 = vector.broadcast %cst_12 : f32 to vector<8x1xf32>
    %20 = arith.divf %18, %19 : vector<8x1xf32>
    %21 = vector.broadcast %13 : vector<8x1xf32> to vector<8x32xf32>
    %22 = arith.subf %1, %21 : vector<8x32xf32>
    %cst_13 = arith.constant 1.000000e-03 : f32
    %23 = vector.broadcast %cst_13 : f32 to vector<8x1xf32>
    %24 = arith.addf %20, %23 : vector<8x1xf32>
    %25 = math.rsqrt %24 : vector<8x1xf32>
    %26 = vector.broadcast %25 : vector<8x1xf32> to vector<8x32xf32>
    %27 = arith.mulf %22, %26 : vector<8x32xf32>
    %cst_14 = arith.constant 1.000000e+00 : f32
    %28 = vector.broadcast %cst_14 : f32 to vector<1x32xf32>
    %29 = arith.addf %28, %8 : vector<1x32xf32>
    %30 = vector.broadcast %29 : vector<1x32xf32> to vector<8x32xf32>
    %31 = arith.mulf %27, %30 : vector<8x32xf32>
    %32 = vector.broadcast %9 : vector<1x32xf32> to vector<8x32xf32>
    %33 = arith.addf %31, %32 : vector<8x32xf32>
    %c0_15 = arith.constant 0 : index
    %c0_16 = arith.constant 0 : index
    %c0_17 = arith.constant 0 : index
    %34 = vector.load %arg6[%c0_15, %c0_16, %c0_17] : memref<1x8x32xf32, #tpu.memory_space<vmem>>, vector<1x8x32xf32>
    %35 = vector.shape_cast %34 : vector<1x8x32xf32> to vector<8x32xf32>
    %36 = vector.shape_cast %33 : vector<8x32xf32> to vector<1x8x32xf32>
    tpu.vector_store %arg6[%c0_15, %c0_16, %c0_17], %36 {strides = array<i32>} : memref<1x8x32xf32, #tpu.memory_space<vmem>>, vector<1x8x32xf32>,
    return
  }
  func.func @transform_0(%arg0: i32, %arg1: i32) -> (i32, i32, i32) {
    %c0_i32 = arith.constant 0 : i32
    %c0_i32_0 = arith.constant 0 : i32
    return %arg0, %arg1, %c0_i32 : i32, i32, i32
  }
  func.func @transform_1(%arg0: i32, %arg1: i32) -> (i32, i32, i32) {
    %c0_i32 = arith.constant 0 : i32
    %c0_i32_0 = arith.constant 0 : i32
    %c0_i32_1 = arith.constant 0 : i32
    return %arg0, %c0_i32, %c0_i32_0 : i32, i32, i32
  }
  func.func @transform_2(%arg0: i32, %arg1: i32) -> (i32, i32) {
    %c0_i32 = arith.constant 0 : i32
    %c0_i32_0 = arith.constant 0 : i32
    %c0_i32_1 = arith.constant 0 : i32
    return %c0_i32, %c0_i32_0 : i32, i32
  }
  func.func @transform_3(%arg0: i32, %arg1: i32) -> (i32, i32) {
    %c0_i32 = arith.constant 0 : i32
    %c0_i32_0 = arith.constant 0 : i32
    %c0_i32_1 = arith.constant 0 : i32
    return %c0_i32, %c0_i32_0 : i32, i32
  }
  func.func @transform_4(%arg0: i32, %arg1: i32) -> (i32, i32, i32) {
    %c0_i32 = arith.constant 0 : i32
    %c0_i32_0 = arith.constant 0 : i32
    return %arg0, %arg1, %c0_i32 : i32, i32, i32
  }
}

</mosaic_0001>

<bundles_post_ra>
// kernel: tpu_custom_call.1
= control target key start
LH: loop header
LB: loop body
LE: loop exit
PB: predicated region body
PF: predicated region fallthrough
CT: control target
= control target key end

     0   :  { %s957_s0 = inlined_call_operand.hbm [shape: f32[2,8,32], index: 0, kind: input, shape index: {}]   ;;  %s958_s1 = inlined_call_operand.hbm [shape: f32[2,1,32], index: 1, kind: input, shape index: {}]   ;;  %s959_s2 = inlined_call_operand.hbm [shape: f32[32,64], index: 2, kind: input, shape index: {}]   ;;  %s960_s3 = inlined_call_operand.vmem [shape: f32[1,64], index: 3, kind: input, shape index: {}]   ;;  %s961_s4 = inlined_call_operand.hbm [shape: f32[2,8,32], index: 4, kind: output, shape index: {}]  }
   0x1   :  { %965 = sst [smem:[#allocation17_spill]] %s959_s2 }
   0x2   :  { %9 = vsyncpa [#allocation3], 0 }
   0x3   :  { %11 = vsyncpa [#allocation3 + $0x1], 0 }
   0x4   :  { %12 = vsyncpa [#allocation6], 0 }
   0x5   :  { %14 = vsyncpa [#allocation6 + $0x1], 0 }
   0x6   :  { %15 = vsyncpa [#allocation4], 0 }
   0x7   :  { %17 = vsyncpa [#allocation4 + $0x1], 0  ;;  %s792_s15 = smov 0   ;;  %s794_s16 = smov 0  }
   0x8   :  { %s796_s17 = smov 0   ;;  %s798_s18 = smov 0  }
   0x9   :  { %s800_s19 = smov 0   ;;  %s802_s20 = smov 0  }
   0xa LB: > { %966 = sst [smem:[#allocation13_spill]] %s748_s17  ;;  %s823_s21 = sadd.s32 4294967295, %s760_s20   ;;  %s760_s20 = sphi %s802_s20, %s23_s20   ;;  %s756_s19 = sphi %s800_s19, %s983_s19   ;;  %s752_s18 = sphi %s798_s18, %s982_s18   ;;  %s748_s17 = sphi %s796_s17, %s978_s17   ;;  %s744_s16 = sphi %s794_s16, %s981_s16   ;;  %s740_s15 = sphi %s792_s15, %s980_s15  }
   0xb   : > { %p480_p0 = scmp.ge.s32.totalorder %s760_s20, 1  ;;  %p58_p1 = scmp.eq.s32.totalorder %s823_s21, 0 }
   0xc   : > { %p164_p2 = scmp.lt.s32.totalorder %s760_s20, 3  ;;  %s967_s2 = sld [smem:[#allocation17_spill]] }
   0xd   : > { %s762_s26 = smov [#allocation7]   ;;  %p482_p6 = scmp.ge.s32.totalorder %s760_s20, 2 }
   0xe   : > { %p831_p3 = pnand %p480_p0, %p164_p2  ;;  %s177_s27 = sshll.u32 %s762_s26, 4  ;;  %s178_s27 = int_to_ptr.vmem [resolvable:$true] %s177_s27 }
   0xf   : > { %s763_s28 = smov 128   ;;  %s764_s29 = smov 8  }
  0x10   : > { %p504_p4 = pneg %p831_p3  ;;  %s479_s30 = sadd.s32 4294967294, %s760_s20  }
  0x11   : > { %s35_s5 = sadd.s32 1, %s756_s19  ;;  %s44_s6 = sadd.s32 1, %s748_s17 }
  0x12   : > { %s175_s24 = sshll.u32 %s967_s2, 4  ;;  %p505_p5 = pnand %p504_p4, %p58_p1  ;;  %s176_s24 = int_to_ptr.hbm [resolvable:$true] %s175_s24 }
  0x13   : > { %p37_p7 = scmp.ge.s32.totalorder %s35_s5, 2  ;;  %p51_p8 = scmp.ne.s32.totalorder %s748_s17, %s744_s16 }
  0x14   : > { %507 = dma.hbm_to_vmem [thread:$0]  (!%p505_p5), %s176_s24, 512, %s178_s27, [#allocation6], %s763_s28, %s763_s28, %s764_s29  }
  0x15   : > { %p52_p9 = scmp.eq.s32.totalorder %s760_s20, 0  ;;  %p57_p10 = scmp.ne.s32.totalorder %s744_s16, %s740_s15 }
  0x16   : > { %s985_s5 = smov (%p37_p7, %s35_s5), 0  ;;  %p151_p13 = scmp.eq.s32.totalorder %s823_s21, 1 }
  0x17   : > { %969 = sst [smem:[#allocation14_spill]] %s985_s5  ;;  %p850_p11 = por %p52_p9, %p51_p8 }
  0x18   : > { %p856_p12 = por %p58_p1, %p57_p10  ;;  %s39_s9 = ssub.s32 %s756_s19, %s985_s5 }
  0x19   : > { %p42_p0 = scmp.eq.s32.totalorder %s39_s9, 0  ;;  %p157_p2 = scmp.eq.s32.totalorder %s479_s30, 1 }
  0x1a   : > { %p863_p4 = por %p151_p13, %p51_p8  ;;  %p520_p5 = scmp.lt.s32.totalorder %s760_s20, 2 }
  0x1b   : > { %s869_s11 = scalar_select %p42_p0, %s748_s17, %s44_s6  }
  0x1c   : > { %p871_p7 = por %p157_p2, %p57_p10  ;;  %s194_s13 = sand.u32 1, %s748_s17  }
  0x1d   : > { %973 = sst [smem:[#allocation15_spill]] %s869_s11  ;;  %s483_s14 = sshll.u32 %s194_s13, 3 }
  0x1e   : > { %s974_s12 = scalar_select %p871_p7, 1, 0 }
  0x1f   : > { %s484_s22 = sshll.u32 %s756_s19, 3  ;;  %s198_s27 = scalar_lea.vmem [#allocation2], %s483_s14 }
  0x20   : > { %975 = sst [smem:[#allocation16_spill]] %s974_s12  ;;  %s203_s26 = scalar_lea.hbm %s957_s0, %s484_s22 }
  0x21   : > { %s207_s28 = sshll.u32 %s198_s27, 4  ;;  %s205_s29 = sshll.u32 %s203_s26, 4  ;;  %s208_s28 = int_to_ptr.vmem [resolvable:$true] %s207_s28  ;;  %s206_s29 = int_to_ptr.hbm [resolvable:$true] %s205_s29 }
  0x22   : > { %p509_p8 = pnand %p520_p5, %p850_p11  ;;  %s214_s30 = sand.u32 1, %s760_s20  }
  0x23   : > { %s195_s6 = scalar_lea.sflag [#allocation3], %s194_s13  ;;  %s220_s5 = scalar_lea.hbm %s958_s1, %s756_s19 }
  0x24   : > { %511 = dma.hbm_to_vmem [thread:$0]  (!%p509_p8), %s206_s29, 128, %s208_s28, %s195_s6  }
  0x25   : > { %s217_s11 = scalar_lea.vmem [#allocation5], %s194_s13  ;;  %s222_s12 = sshll.u32 %s220_s5, 4  ;;  %s223_s12 = int_to_ptr.hbm [resolvable:$true] %s222_s12 }
  0x26   : > { %s224_s17 = sshll.u32 %s217_s11, 4  ;;  %s215_s22 = scalar_lea.sflag [#allocation6], %s214_s30  ;;  %s225_s17 = int_to_ptr.vmem [resolvable:$true] %s224_s17 }
  0x27   : > { %514 = dma.hbm_to_vmem [thread:$0]  (!%p509_p8), %s223_s12, 16, %s225_s17, %s215_s22  }
  0x28   : > { %233 = sbr.rel (%p831_p3) target bundleno = 323 (0x143), region = 36  ;;  %s890_s7 = sand.u32 (!%p831_p3), 1, %s744_s16  }
  0x29   : > { %s486_s14 = sshll.u32 (!%p831_p3), %s890_s7, 3  ;;  %s236_s2 = scalar_lea.sflag (!%p831_p3), [#allocation3], %s890_s7 }
  0x2a   : > { %s239_s13 = scalar_lea.vmem (!%p831_p3), [#allocation2], %s486_s14 }
  0x2d   : > { %723 = dma.done.wait (%p856_p12), %s236_s2, 128  }
  0x2e   : > { %725 = vsyncadd (%p856_p12), %s236_s2, 4294967168  ;;  %s245_s17 = sand.u32 1, %s823_s21   ;;  %s248_s5 = scalar_lea.vmem [#allocation5], %s890_s7 }
  0x2f   : > { %s246_s25 = scalar_lea.sflag [#allocation6], %s245_s17 }
  0x30   : > { %727 = dma.done.wait (%p856_p12), %s246_s25, 16  }
  0x31   : > { %729 = vsyncadd (%p856_p12), %s246_s25, 4294967280 }
  0x32   : > { %731 = dma.done.wait (%p58_p1), [#allocation6], 512  }
  0x33   : > { %733 = vsyncadd (%p58_p1), [#allocation6], 4294966784  ;;  %vm290_vm0 = vcmask 261120   ;;  %v283_v0 = vld [vmem:[%s239_s13] sm:$0xff]  ;;  %v285_v5 = vld [vmem:[#allocation7] sm:$0xff]  ;;  %v765_v7 = vmov 32.0  }
  0x34   : > { %v288_v1 = vld [vmem:[#allocation7 + $0x18] sm:$0xff]  ;;  %v287_v2 = vld [vmem:[#allocation7 + $0x10] sm:$0xff]  ;;  %v314_v3 = vsel %vm290_vm0, %v283_v0, 0.0  ;;  %v286_v4 = vld [vmem:[#allocation7 + $0x8] sm:$0xff]  ;;  %576 = vrcp.f32 %v765_v7  ;;  %s766_s11 = smov 96   ;;  %s491_s12 = sshll.u32 %s752_s18, 3 }
  0x35   : > { %306 = vmatpush.msra.mxu0 %v288_v1  ;;  %315 = vadd.xlane.f32.xlu0 %v314_v3  ;;  %v284_v6 = vld [vmem:[%s248_s5] sm:$0x1]  ;;  %s365_s26 = scalar_lea.hbm %s961_s4, %s491_s12  ;;  %s282_s27 = scalar_lea.vmem [#allocation8], %s486_s14 }
  0x36   : > { %v289_v19 = vld [vmem:[%s960_s3] sm:$0x1]  ;;  %s367_s28 = sshll.u32 %s282_s27, 4  ;;  %s369_s29 = sshll.u32 %s365_s26, 4  ;;  %s368_s28 = int_to_ptr.vmem [resolvable:$true] %s367_s28  ;;  %s370_s29 = int_to_ptr.hbm [resolvable:$true] %s369_s29 }
  0x37   : > { %307 = vmatpush.msra.mxu0 %v287_v2  ;;  %s354_s18 = scalar_lea.sflag [#allocation4], %s890_s7  ;;  %s684_s30 = sshra.s32 %s370_s29, 4  ;;  %s685_s30 = int_to_ptr.hbm [resolvable:$true] %s684_s30 }
  0x38   : > { %s686_s6 = scalar_lea.hbm %s685_s30, 8  ;;  %s690_s14 = scalar_lea.hbm %s961_s4, 16 }
  0x39   : > { %308 = vmatpush.msra.mxu0 %v286_v4  ;;  %p687_p1 = scmp.ne.s32.totalorder %s685_s30, %s686_s6  ;;  %p691_p10 = scmp.lt.s32.totalorder %s685_s30, %s961_s4 }
  0x3a   : > { %v577_v8 = vpop.eup %576  ;;  %p692_p11 = scmp.lt.s32.totalorder %s690_s14, %s686_s6 }
  0x3b   : > { %309 = vmatpush.msra.mxu0 %v285_v5  ;;  %v318_v9 = vmul.f32 32.0, %v577_v8  ;;  %vm322_vm1 = vweird.f32 %v577_v8  ;;  %p688_p3 = pnand %p687_p1, %p863_p4 }
  0x3c   : > { %489 = vmatmul.msk.f32.vlgmr.msra.gmra.mxu0 %vm290_vm0, %v284_v6  ;;  %p693_p12 = por %p692_p11, %p691_p10 }
  0x3d   : > { %v319_v10 = vsub.f32 1.0, %v318_v9  ;;  %p689_p9 = pneg %p688_p3 }
  0x3f   : > { %v320_v11 = vmul.f32 %v577_v8, %v319_v10  ;;  %p694_p13 = pnand %p693_p12, %p689_p9 }
  0x41   : > { %v321_v12 = vadd.f32 %v577_v8, %v320_v11 }
  0x43   : > { %v323_v13 = vsel %vm322_vm1, %v577_v8, %v321_v12 }
  0xa8   : > { %v316_v14 = vpop.xlane.xlu0 %315 }
  0xa9   : > { %v324_v15 = vmul.f32 %v323_v13, %v316_v14 }
  0xab   : > { %v325_v16 = vsub.f32 %v283_v0, %v324_v15 }
  0xad   : > { %v326_v17 = vmul.f32 %v325_v16, %v325_v16 }
  0xaf   : > { %v327_v18 = vsel %vm290_vm0, %v326_v17, 0.0 }
  0xb0   : > { %328 = vadd.xlane.f32.xlu0 %v327_v18 }
  0xb9   : > { %v311_v20 = vpop.f32.mrf.mxu0 }
  0xba   : > { %v312_v21 = vadd.f32 %v311_v20, %v289_v19 }
  0xbc   : > { %v346_v22 = vperm.slane %v312_v21, 0  ;;  %v343_v31 = vadd.f32 1.0, %v312_v21 }
  0xbe   : > { %348 = vrot.lane.b32.xlu1 %v346_v22, %s766_s11  ;;  %v344_v34 = vperm.slane %v343_v31, 0 }
 0x123   : > { %v329_v23 = vpop.xlane.xlu0 %328 }
 0x124   : > { %v330_v24 = vmul.f32 %v329_v23, %v323_v13 }
 0x126   : > { %v331_v25 = vadd.f32 0.001, %v330_v24 }
 0x128   : > { %578 = vrsqrt.f32 %v331_v25  ;;  %vm338_vm3 = vweird.f32 %v331_v25 }
 0x12e   : > { %v579_v26 = vpop.eup %578 }
 0x12f   : > { %v333_v27 = vmul.f32 %v579_v26, %v331_v25  ;;  %vm339_vm2 = vweird.f32 %v579_v26 }
 0x130   : > { %vm340_vm4 = vmor %vm338_vm3, %vm339_vm2  ;;  %v349_v36 = vpop.permute.xlu1 %348 }
 0x131   : > { %v334_v28 = vmul.f32 %v579_v26, %v333_v27 }
 0x133   : > { %v335_v29 = vmul.f32 0.5, %v334_v28 }
 0x135   : > { %v336_v30 = vsub.f32 1.5, %v335_v29 }
 0x137   : > { %v337_v32 = vmul.f32 %v579_v26, %v336_v30 }
 0x139   : > { %v341_v33 = vsel %vm340_vm4, %v579_v26, %v337_v32 }
 0x13a   : > { %v342_v35 = vmul.f32 %v341_v33, %v325_v16 }
 0x13c   : > { %v345_v37 = vmul.f32 %v344_v34, %v342_v35 }
 0x13e   : > { %v351_v38 = vadd.f32 %v349_v36, %v345_v37 }
 0x140   : > { %352 = vst.msk [vmem:[%s282_s27] sm:$0xff] %vm290_vm0, %v351_v38 }
 0x141   : > { %697 = shalt.err (!%p694_p13)
}
 0x142   : > { %502 = dma.vmem_to_hbm [thread:$0]  (%p863_p4), %s368_s28, 128, %s370_s29, %s354_s18  }
 0x143 PF: > { %s381_s17 = sand.u32 1, %s740_s15   ;;  %p516_p0 = pnand %p482_p6, %p871_p7 }
 0x144   : > { %s382_s25 = scalar_lea.sflag [#allocation4], %s381_s17 }
 0x145   : > { %p517_p2 = pneg %p516_p0 }
 0x147   : > { %735 = dma.done.wait (%p517_p2), %s382_s25, 128  }
 0x148   : > { %737 = vsyncadd (%p517_p2), %s382_s25, 4294967168  ;;  %s23_s20 = sadd.s32 1, %s760_s20   ;;  %s977_s5 = sld [smem:[#allocation13_spill]] }
 0x149   : > { %p20_p5 = scmp.ge.s32.totalorder %s23_s20, 4   ;;  %s978_s17 = sld [smem:[#allocation15_spill]] }
 0x14a   : > { %s979_s10 = sld [smem:[#allocation14_spill]]  ;;  %s980_s15 = smov %s744_s16 }
 0x14b   : > { %s982_s18 = smov %s756_s19 }
 0x14c   :  { %22 = sbr.rel (!%p20_p5) target bundleno = 10 (0xa), region = 98 }
 0x14e   : > { %s981_s16 = smov %s977_s5 }
 0x150   : > { %s983_s19 = smov %s979_s10 }
 0x151   :  { %388 = vsyncpa [#allocation3], 1 }
 0x152   :  { %390 = vsyncpa [#allocation3 + $0x1], 1 }
 0x153   :  { %391 = vsyncpa [#allocation6], 1 }
 0x154   :  { %393 = vsyncpa [#allocation6 + $0x1], 1 }
 0x155   :  { %394 = vsyncpa [#allocation4], 1 }
 0x156   :  { %396 = vsyncpa [#allocation4 + $0x1], 1 }

// kernel: tpu_custom_call.1
= control target key start
LH: loop header
LB: loop body
LE: loop exit
PB: predicated region body
PF: predicated region fallthrough
CT: control target
= control target key end

     0   :  { %s957_s0 = inlined_call_operand.hbm [shape: f32[2,8,32], index: 0, kind: input, shape index: {}]   ;;  %s958_s1 = inlined_call_operand.hbm [shape: f32[2,1,32], index: 1, kind: input, shape index: {}]   ;;  %s959_s2 = inlined_call_operand.hbm [shape: f32[32,64], index: 2, kind: input, shape index: {}]   ;;  %s960_s3 = inlined_call_operand.vmem [shape: f32[1,64], index: 3, kind: input, shape index: {}]   ;;  %s961_s4 = inlined_call_operand.hbm [shape: f32[2,8,32], index: 4, kind: output, shape index: {}]  }
   0x1   :  { %965 = sst [smem:[#allocation17_spill]] %s959_s2 }
   0x2   :  { %9 = vsyncpa [#allocation3], 0 }
   0x3   :  { %11 = vsyncpa [#allocation3 + $0x1], 0 }
   0x4   :  { %12 = vsyncpa [#allocation6], 0 }
   0x5   :  { %14 = vsyncpa [#allocation6 + $0x1], 0 }
   0x6   :  { %15 = vsyncpa [#allocation4], 0 }
   0x7   :  { %17 = vsyncpa [#allocation4 + $0x1], 0  ;;  %s792_s15 = smov 0   ;;  %s794_s16 = smov 0  }
   0x8   :  { %s796_s17 = smov 0   ;;  %s798_s18 = smov 0  }
   0x9   :  { %s800_s19 = smov 0   ;;  %s802_s20 = smov 0  }
   0xa LB: > { %966 = sst [smem:[#allocation13_spill]] %s748_s17  ;;  %s823_s21 = sadd.s32 4294967295, %s760_s20   ;;  %s760_s20 = sphi %s802_s20, %s23_s20   ;;  %s756_s19 = sphi %s800_s19, %s983_s19   ;;  %s752_s18 = sphi %s798_s18, %s982_s18   ;;  %s748_s17 = sphi %s796_s17, %s978_s17   ;;  %s744_s16 = sphi %s794_s16, %s981_s16   ;;  %s740_s15 = sphi %s792_s15, %s980_s15  }
   0xb   : > { %p480_p0 = scmp.ge.s32.totalorder %s760_s20, 1  ;;  %p58_p1 = scmp.eq.s32.totalorder %s823_s21, 0 }
   0xc   : > { %p164_p2 = scmp.lt.s32.totalorder %s760_s20, 3  ;;  %s967_s2 = sld [smem:[#allocation17_spill]] }
   0xd   : > { %s762_s26 = smov [#allocation7]   ;;  %p482_p6 = scmp.ge.s32.totalorder %s760_s20, 2 }
   0xe   : > { %p831_p3 = pnand %p480_p0, %p164_p2  ;;  %s177_s27 = sshll.u32 %s762_s26, 4  ;;  %s178_s27 = int_to_ptr.vmem [resolvable:$true] %s177_s27 }
   0xf   : > { %s763_s28 = smov 128   ;;  %s764_s29 = smov 8  }
  0x10   : > { %p504_p4 = pneg %p831_p3  ;;  %s479_s30 = sadd.s32 4294967294, %s760_s20  }
  0x11   : > { %s35_s5 = sadd.s32 1, %s756_s19  ;;  %s44_s6 = sadd.s32 1, %s748_s17 }
  0x12   : > { %s175_s24 = sshll.u32 %s967_s2, 4  ;;  %p505_p5 = pnand %p504_p4, %p58_p1  ;;  %s176_s24 = int_to_ptr.hbm [resolvable:$true] %s175_s24 }
  0x13   : > { %p37_p7 = scmp.ge.s32.totalorder %s35_s5, 2  ;;  %p51_p8 = scmp.ne.s32.totalorder %s748_s17, %s744_s16 }
  0x14   : > { %507 = dma.hbm_to_vmem [thread:$0]  (!%p505_p5), %s176_s24, 512, %s178_s27, [#allocation6], %s763_s28, %s763_s28, %s764_s29  }
  0x15   : > { %p52_p9 = scmp.eq.s32.totalorder %s760_s20, 0  ;;  %p57_p10 = scmp.ne.s32.totalorder %s744_s16, %s740_s15 }
  0x16   : > { %s985_s5 = smov (%p37_p7, %s35_s5), 0  ;;  %p151_p13 = scmp.eq.s32.totalorder %s823_s21, 1 }
  0x17   : > { %969 = sst [smem:[#allocation14_spill]] %s985_s5  ;;  %p850_p11 = por %p52_p9, %p51_p8 }
  0x18   : > { %p856_p12 = por %p58_p1, %p57_p10  ;;  %s39_s9 = ssub.s32 %s756_s19, %s985_s5 }
  0x19   : > { %p42_p0 = scmp.eq.s32.totalorder %s39_s9, 0  ;;  %p157_p2 = scmp.eq.s32.totalorder %s479_s30, 1 }
  0x1a   : > { %p863_p4 = por %p151_p13, %p51_p8  ;;  %p520_p5 = scmp.lt.s32.totalorder %s760_s20, 2 }
  0x1b   : > { %s869_s11 = scalar_select %p42_p0, %s748_s17, %s44_s6  }
  0x1c   : > { %p871_p7 = por %p157_p2, %p57_p10  ;;  %s194_s13 = sand.u32 1, %s748_s17  }
  0x1d   : > { %973 = sst [smem:[#allocation15_spill]] %s869_s11  ;;  %s483_s14 = sshll.u32 %s194_s13, 3 }
  0x1e   : > { %s974_s12 = scalar_select %p871_p7, 1, 0 }
  0x1f   : > { %s484_s22 = sshll.u32 %s756_s19, 3  ;;  %s198_s27 = scalar_lea.vmem [#allocation2], %s483_s14 }
  0x20   : > { %975 = sst [smem:[#allocation16_spill]] %s974_s12  ;;  %s203_s26 = scalar_lea.hbm %s957_s0, %s484_s22 }
  0x21   : > { %s207_s28 = sshll.u32 %s198_s27, 4  ;;  %s205_s29 = sshll.u32 %s203_s26, 4  ;;  %s208_s28 = int_to_ptr.vmem [resolvable:$true] %s207_s28  ;;  %s206_s29 = int_to_ptr.hbm [resolvable:$true] %s205_s29 }
  0x22   : > { %p509_p8 = pnand %p520_p5, %p850_p11  ;;  %s214_s30 = sand.u32 1, %s760_s20  }
  0x23   : > { %s195_s6 = scalar_lea.sflag [#allocation3], %s194_s13  ;;  %s220_s5 = scalar_lea.hbm %s958_s1, %s756_s19 }
  0x24   : > { %511 = dma.hbm_to_vmem [thread:$0]  (!%p509_p8), %s206_s29, 128, %s208_s28, %s195_s6  }
  0x25   : > { %s217_s11 = scalar_lea.vmem [#allocation5], %s194_s13  ;;  %s222_s12 = sshll.u32 %s220_s5, 4  ;;  %s223_s12 = int_to_ptr.hbm [resolvable:$true] %s222_s12 }
  0x26   : > { %s224_s17 = sshll.u32 %s217_s11, 4  ;;  %s215_s22 = scalar_lea.sflag [#allocation6], %s214_s30  ;;  %s225_s17 = int_to_ptr.vmem [resolvable:$true] %s224_s17 }
  0x27   : > { %514 = dma.hbm_to_vmem [thread:$0]  (!%p509_p8), %s223_s12, 16, %s225_s17, %s215_s22  }
  0x28   : > { %233 = sbr.rel (%p831_p3) target bundleno = 323 (0x143), region = 36  ;;  %s890_s7 = sand.u32 (!%p831_p3), 1, %s744_s16  }
  0x29   : > { %s486_s14 = sshll.u32 (!%p831_p3), %s890_s7, 3  ;;  %s236_s2 = scalar_lea.sflag (!%p831_p3), [#allocation3], %s890_s7 }
  0x2a   : > { %s239_s13 = scalar_lea.vmem (!%p831_p3), [#allocation2], %s486_s14 }
  0x2d   : > { %723 = dma.done.wait (%p856_p12), %s236_s2, 128  }
  0x2e   : > { %725 = vsyncadd (%p856_p12), %s236_s2, 4294967168  ;;  %s245_s17 = sand.u32 1, %s823_s21   ;;  %s248_s5 = scalar_lea.vmem [#allocation5], %s890_s7 }
  0x2f   : > { %s246_s25 = scalar_lea.sflag [#allocation6], %s245_s17 }
  0x30   : > { %727 = dma.done.wait (%p856_p12), %s246_s25, 16  }
  0x31   : > { %729 = vsyncadd (%p856_p12), %s246_s25, 4294967280 }
  0x32   : > { %731 = dma.done.wait (%p58_p1), [#allocation6], 512  }
  0x33   : > { %733 = vsyncadd (%p58_p1), [#allocation6], 4294966784  ;;  %vm290_vm0 = vcmask 261120   ;;  %v283_v0 = vld [vmem:[%s239_s13] sm:$0xff]  ;;  %v285_v5 = vld [vmem:[#allocation7] sm:$0xff]  ;;  %v765_v7 = vmov 32.0  }
  0x34   : > { %v288_v1 = vld [vmem:[#allocation7 + $0x18] sm:$0xff]  ;;  %v287_v2 = vld [vmem:[#allocation7 + $0x10] sm:$0xff]  ;;  %v314_v3 = vsel %vm290_vm0, %v283_v0, 0.0  ;;  %v286_v4 = vld [vmem:[#allocation7 + $0x8] sm:$0xff]  ;;  %576 = vrcp.f32 %v765_v7  ;;  %s766_s11 = smov 96   ;;  %s491_s12 = sshll.u32 %s752_s18, 3 }
  0x35   : > { %306 = vmatpush.msra.mxu0 %v288_v1  ;;  %315 = vadd.xlane.f32.xlu0 %v314_v3  ;;  %v284_v6 = vld [vmem:[%s248_s5] sm:$0x1]  ;;  %s365_s26 = scalar_lea.hbm %s961_s4, %s491_s12  ;;  %s282_s27 = scalar_lea.vmem [#allocation8], %s486_s14 }
  0x36   : > { %v289_v19 = vld [vmem:[%s960_s3] sm:$0x1]  ;;  %s367_s28 = sshll.u32 %s282_s27, 4  ;;  %s369_s29 = sshll.u32 %s365_s26, 4  ;;  %s368_s28 = int_to_ptr.vmem [resolvable:$true] %s367_s28  ;;  %s370_s29 = int_to_ptr.hbm [resolvable:$true] %s369_s29 }
  0x37   : > { %307 = vmatpush.msra.mxu0 %v287_v2  ;;  %s354_s18 = scalar_lea.sflag [#allocation4], %s890_s7  ;;  %s684_s30 = sshra.s32 %s370_s29, 4  ;;  %s685_s30 = int_to_ptr.hbm [resolvable:$true] %s684_s30 }
  0x38   : > { %s686_s6 = scalar_lea.hbm %s685_s30, 8  ;;  %s690_s14 = scalar_lea.hbm %s961_s4, 16 }
  0x39   : > { %308 = vmatpush.msra.mxu0 %v286_v4  ;;  %p687_p1 = scmp.ne.s32.totalorder %s685_s30, %s686_s6  ;;  %p691_p10 = scmp.lt.s32.totalorder %s685_s30, %s961_s4 }
  0x3a   : > { %v577_v8 = vpop.eup %576  ;;  %p692_p11 = scmp.lt.s32.totalorder %s690_s14, %s686_s6 }
  0x3b   : > { %309 = vmatpush.msra.mxu0 %v285_v5  ;;  %v318_v9 = vmul.f32 32.0, %v577_v8  ;;  %vm322_vm1 = vweird.f32 %v577_v8  ;;  %p688_p3 = pnand %p687_p1, %p863_p4 }
  0x3c   : > { %489 = vmatmul.msk.f32.vlgmr.msra.gmra.mxu0 %vm290_vm0, %v284_v6  ;;  %p693_p12 = por %p692_p11, %p691_p10 }
  0x3d   : > { %v319_v10 = vsub.f32 1.0, %v318_v9  ;;  %p689_p9 = pneg %p688_p3 }
  0x3f   : > { %v320_v11 = vmul.f32 %v577_v8, %v319_v10  ;;  %p694_p13 = pnand %p693_p12, %p689_p9 }
  0x41   : > { %v321_v12 = vadd.f32 %v577_v8, %v320_v11 }
  0x43   : > { %v323_v13 = vsel %vm322_vm1, %v577_v8, %v321_v12 }
  0xa8   : > { %v316_v14 = vpop.xlane.xlu0 %315 }
  0xa9   : > { %v324_v15 = vmul.f32 %v323_v13, %v316_v14 }
  0xab   : > { %v325_v16 = vsub.f32 %v283_v0, %v324_v15 }
  0xad   : > { %v326_v17 = vmul.f32 %v325_v16, %v325_v16 }
  0xaf   : > { %v327_v18 = vsel %vm290_vm0, %v326_v17, 0.0 }
  0xb0   : > { %328 = vadd.xlane.f32.xlu0 %v327_v18 }
  0xb9   : > { %v311_v20 = vpop.f32.mrf.mxu0 }
  0xba   : > { %v312_v21 = vadd.f32 %v311_v20, %v289_v19 }
  0xbc   : > { %v346_v22 = vperm.slane %v312_v21, 0  ;;  %v343_v31 = vadd.f32 1.0, %v312_v21 }
  0xbe   : > { %348 = vrot.lane.b32.xlu1 %v346_v22, %s766_s11  ;;  %v344_v34 = vperm.slane %v343_v31, 0 }
 0x123   : > { %v329_v23 = vpop.xlane.xlu0 %328 }
 0x124   : > { %v330_v24 = vmul.f32 %v329_v23, %v323_v13 }
 0x126   : > { %v331_v25 = vadd.f32 0.001, %v330_v24 }
 0x128   : > { %578 = vrsqrt.f32 %v331_v25  ;;  %vm338_vm3 = vweird.f32 %v331_v25 }
 0x12e   : > { %v579_v26 = vpop.eup %578 }
 0x12f   : > { %v333_v27 = vmul.f32 %v579_v26, %v331_v25  ;;  %vm339_vm2 = vweird.f32 %v579_v26 }
 0x130   : > { %vm340_vm4 = vmor %vm338_vm3, %vm339_vm2  ;;  %v349_v36 = vpop.permute.xlu1 %348 }
 0x131   : > { %v334_v28 = vmul.f32 %v579_v26, %v333_v27 }
 0x133   : > { %v335_v29 = vmul.f32 0.5, %v334_v28 }
 0x135   : > { %v336_v30 = vsub.f32 1.5, %v335_v29 }
 0x137   : > { %v337_v32 = vmul.f32 %v579_v26, %v336_v30 }
 0x139   : > { %v341_v33 = vsel %vm340_vm4, %v579_v26, %v337_v32 }
 0x13a   : > { %v342_v35 = vmul.f32 %v341_v33, %v325_v16 }
 0x13c   : > { %v345_v37 = vmul.f32 %v344_v34, %v342_v35 }
 0x13e   : > { %v351_v38 = vadd.f32 %v349_v36, %v345_v37 }
 0x140   : > { %352 = vst.msk [vmem:[%s282_s27] sm:$0xff] %vm290_vm0, %v351_v38 }
 0x141   : > { %697 = shalt.err (!%p694_p13)
}
 0x142   : > { %502 = dma.vmem_to_hbm [thread:$0]  (%p863_p4), %s368_s28, 128, %s370_s29, %s354_s18  }
 0x143 PF: > { %s381_s17 = sand.u32 1, %s740_s15   ;;  %p516_p0 = pnand %p482_p6, %p871_p7 }
 0x144   : > { %s382_s25 = scalar_lea.sflag [#allocation4], %s381_s17 }
 0x145   : > { %p517_p2 = pneg %p516_p0 }
 0x147   : > { %735 = dma.done.wait (%p517_p2), %s382_s25, 128  }
 0x148   : > { %737 = vsyncadd (%p517_p2), %s382_s25, 4294967168  ;;  %s23_s20 = sadd.s32 1, %s760_s20   ;;  %s977_s5 = sld [smem:[#allocation13_spill]] }
 0x149   : > { %p20_p5 = scmp.ge.s32.totalorder %s23_s20, 4   ;;  %s978_s17 = sld [smem:[#allocation15_spill]] }
 0x14a   : > { %s979_s10 = sld [smem:[#allocation14_spill]]  ;;  %s980_s15 = smov %s744_s16 }
 0x14b   : > { %s982_s18 = smov %s756_s19 }
 0x14c   :  { %22 = sbr.rel (!%p20_p5) target bundleno = 10 (0xa), region = 98 }
 0x14e   : > { %s981_s16 = smov %s977_s5 }
 0x150   : > { %s983_s19 = smov %s979_s10 }
 0x151   :  { %388 = vsyncpa [#allocation3], 1 }
 0x152   :  { %390 = vsyncpa [#allocation3 + $0x1], 1 }
 0x153   :  { %391 = vsyncpa [#allocation6], 1 }
 0x154   :  { %393 = vsyncpa [#allocation6 + $0x1], 1 }
 0x155   :  { %394 = vsyncpa [#allocation4], 1 }
 0x156   :  { %396 = vsyncpa [#allocation4 + $0x1], 1 }

</bundles_post_ra>
